<compile_context>
chip_gen: v5e
topology: v5e:2x2
jax: 0.10.0
libtpu: 0.0.40
codegen_flags: <defaults>
</compile_context>

<pallas_src>
import functools

import jax
import jax.numpy as jnp
from jax import lax
from jax.experimental import pallas as pl
from jax.experimental.pallas import tpu as pltpu

LANES = 128
SUBLANES = 8


def _fold(x):
    """(tile_rows, 128) -> (8, 128) partial sum using plain vreg adds."""
    r = x.shape[0]
    if r % SUBLANES == 0:
        # Leading-axis reduce over whole sublane groups: pure VALU, no XLU.
        return jnp.sum(x.reshape(r // SUBLANES, SUBLANES, LANES), axis=0)
    # Tiny tile (only when rows < 8): reduce fully, park result in sublane 0.
    s = jnp.sum(x, axis=0, keepdims=True)                      # (1, 128)
    row = lax.broadcasted_iota(jnp.int32, (SUBLANES, LANES), 0)
    return jnp.where(row == 0, jnp.broadcast_to(s, (SUBLANES, LANES)), 0.0)


def _bce_dice_sums_kernel(pred_ref, targ_ref, out_ref, *, rows, tile_rows):
    """Accumulate per-(class, batch) partial sums for soft-Dice + BCE-with-logits.

    pred_ref / targ_ref : (1, 1, tile_rows, 128) VMEM tiles (raw logits / targets)
    out_ref             : (1, 1, 3, 8, 128) f32 accumulator, VMEM-resident across
                          the m (row-tile) reduction axis:
                            [...,0,:,:] = sum(pred * target)
                            [...,1,:,:] = sum(pred) + sum(target)
                            [...,2,:,:] = sum(bce_with_logits(pred, target))
    """
    m = pl.program_id(2)

    @pl.when(m == 0)
    def _():
        out_ref[...] = jnp.zeros_like(out_ref)

    p = pred_ref[0, 0].astype(jnp.float32)   # (tile_rows, 128)
    t = targ_ref[0, 0].astype(jnp.float32)

    if rows % tile_rows:  # static: last row-tile is partially out of bounds
        ridx = m * tile_rows + lax.broadcasted_iota(
            jnp.int32, (tile_rows, LANES), 0)
        valid = ridx < rows
        p = jnp.where(valid, p, 0.0)
        t = jnp.where(valid, t, 0.0)

    pt = p * t
    # Numerically-stable BCE with logits: max(x,0) - x*y + log1p(exp(-|x|)).
    # Zeroed (masked / lane-padded) elements contribute exactly log(2) each;
    # the wrapper subtracts that analytically.
    bce = jnp.maximum(p, 0.0) - pt + jnp.log1p(jnp.exp(-jnp.abs(p)))

    out_ref[0, 0, 0, :, :] += _fold(pt)
    out_ref[0, 0, 1, :, :] += _fold(p + t)
    out_ref[0, 0, 2, :, :] += _fold(bce)


def _pick_tile_rows(rows, max_tile_rows):
    """Largest sublane-aligned row-tile <= max_tile_rows (no tiny-tile cliff)."""
    if rows < SUBLANES:
        return rows                                   # single sub-sublane tile
    cap = max(SUBLANES, (max_tile_rows // SUBLANES) * SUBLANES)
    return min((rows // SUBLANES) * SUBLANES, cap)


def bce_dice_loss(pred, target, num_classes, smooth=1e-07, max_tile_rows=2048):
    """Forward pass of BCEDiceLoss.

    pred/target: (N, C, D, H, W) logits / {0,1} targets (any float dtype).
    max_tile_rows: 2048 is safe for v5e/v6e; pass 4096 on v7x to amortize
    per-grid-step overhead (vmem_limit_bytes is raised automatically).
    """
    assert pred.shape == target.shape and pred.ndim == 5
    N, C = pred.shape[0], pred.shape[1]
    assert C == num_classes
    dhw = 1
    for d in pred.shape[2:]:
        dhw *= d

    # Flatten spatial dims; keep native dtype (kernel upcasts per tile).
    p = pred.reshape(N, C, dhw)
    t = target.reshape(N, C, dhw)

    rows = pl.cdiv(dhw, LANES)
    lane_pad = rows * LANES - dhw
    if lane_pad:
        # TODO(synk): only hit when D*H*W is not a multiple of 128; this is a
        # full HBM pass over both tensors. Typical segmentation volumes avoid it.
        p = jnp.pad(p, ((0, 0), (0, 0), (0, lane_pad)))
        t = jnp.pad(t, ((0, 0), (0, 0), (0, lane_pad)))
    p = p.reshape(N, C, rows, LANES)
    t = t.reshape(N, C, rows, LANES)

    tile_rows = _pick_tile_rows(rows, max_tile_rows)
    num_m = pl.cdiv(rows, tile_rows)
    grid = (C, N, num_m)

    kernel = functools.partial(_bce_dice_sums_kernel,
                               rows=rows, tile_rows=tile_rows)

    cp_kwargs = dict(dimension_semantics=("parallel", "parallel", "arbitrary"))
    if tile_rows > 2048:
        cp_kwargs["vmem_limit_bytes"] = 64 * 1024 * 1024

    sums = pl.pallas_call(
        kernel,
        out_shape=jax.ShapeDtypeStruct((C, N, 3, SUBLANES, LANES), jnp.float32),
        grid_spec=pltpu.PrefetchScalarGridSpec(
            num_scalar_prefetch=0,
            grid=grid,
            in_specs=[
                pl.BlockSpec((1, 1, tile_rows, LANES),
                             lambda c, n, m: (n, c, m, 0)),
                pl.BlockSpec((1, 1, tile_rows, LANES),
                             lambda c, n, m: (n, c, m, 0)),
            ],
            out_specs=pl.BlockSpec((1, 1, 3, SUBLANES, LANES),
                                   lambda c, n, m: (c, n, 0, 0, 0)),
        ),
        compiler_params=pltpu.CompilerParams(**cp_kwargs),
    )(p, t)

    per_class = jnp.sum(sums, axis=(1, 3, 4))        # (C, 3) final reduce in JAX
    inter = per_class[:, 0]
    pts = per_class[:, 1]
    bsum = per_class[:, 2]

    # Remove the exact BCE contribution of zeroed elements (lane pad + masked
    # tail rows): log(2) per element.
    zero_elems = N * (num_m * tile_rows * LANES - dhw)
    bsum = bsum - jnp.float32(zero_elems) * jnp.log(jnp.float32(2.0))

    dice = (2.0 * inter + smooth) / (pts + smooth)
    dsc = jnp.sum(1.0 - dice)                         # sum_c (1 - softdice_c)
    bce = jnp.sum(bsum / jnp.float32(N * dhw))        # sum_c mean-BCE_c
    return bce + dsc


def _reference_loss(pred, target, num_classes, smooth=1e-07):
    """Pure-JAX reference mirroring the PyTorch module."""
    pred = pred.astype(jnp.float32)
    target = target.astype(jnp.float32)
    total = jnp.float32(0.0)
    for c in range(num_classes):
        x = pred[:, c].reshape(-1)
        y = target[:, c].reshape(-1)
        inter = jnp.sum(x * y)
        dice = (2.0 * inter + smooth) / (jnp.sum(x) + jnp.sum(y) + smooth)
        bce = jnp.mean(jnp.maximum(x, 0.0) - x * y
                       + jnp.log1p(jnp.exp(-jnp.abs(x))))
        total = total + (1.0 - dice) + bce
    return total


if __name__ == "__main__":
    # (shape, max_tile_rows): exercise (a) the no-pad single-tile path,
    # (b) the multi-tile + masked ragged-tail path, (c) the lane-pad fallback.
    cases = [
        ((2, 3, 4, 8, 16), 2048),    # dhw=512 : rows=4, single tiny tile
        ((2, 3, 3, 8, 128), 16),     # dhw=3072: rows=24, 2 tiles, masked tail
        ((2, 3, 3, 5, 7), 2048),     # dhw=105 : lane-pad (not multiple of 128)
    ]

    key = jax.random.PRNGKey(0)
    for i, (shape, mtr) in enumerate(cases):
        kp, kt = jax.random.split(jax.random.fold_in(key, i))
        num_classes = shape[1]
        pred = jax.random.normal(kp, shape, dtype=jnp.float32)
        target = jax.random.bernoulli(kt, 0.5, shape).astype(jnp.float32)

        loss_fn = jax.jit(functools.partial(
            bce_dice_loss, num_classes=num_classes, max_tile_rows=mtr))
        loss = jax.block_until_ready(loss_fn(pred, target))

        ref = jax.block_until_ready(_reference_loss(pred, target, num_classes))
        assert jnp.allclose(loss, ref, rtol=1e-5, atol=1e-5), (shape, loss, ref)

    print("KERNEL_OK")
</pallas_src>

<mosaic_0001>
module attributes {stable_mosaic.version = 11 : i64} {
  func.func @_bce_dice_sums_kernel(%arg0: i32, %arg1: i32, %arg2: i32, %arg3: memref<1x1x4x128xf32, #tpu.memory_space<vmem>>, %arg4: memref<1x1x4x128xf32, #tpu.memory_space<vmem>>, %arg5: memref<1x1x3x8x128xf32, #tpu.memory_space<vmem>>) attributes {dimension_semantics = [#tpu.dimension_semantics<parallel>, #tpu.dimension_semantics<parallel>, #tpu.dimension_semantics<arbitrary>], iteration_bounds = array<i64: 3, 2, 1>, scalar_prefetch = 0 : i64, scratch_operands = 0 : i64, tpu.core_type = #tpu.core_type<tc>, window_params = [{transform_indices = @transform_0, window_bounds = array<i64: 1, 1, 4, 128>}, {transform_indices = @transform_1, window_bounds = array<i64: 1, 1, 4, 128>}, {transform_indices = @transform_2, window_bounds = array<i64: 1, 1, 3, 8, 128>}]} {
    %c0_i32 = arith.constant 0 : i32
    %0 = arith.cmpi eq, %arg2, %c0_i32 : i32
    %1 = arith.extui %0 : i1 to i32
    %c0_i32_0 = arith.constant 0 : i32
    %2 = arith.cmpi ne, %1, %c0_i32_0 : i32
    scf.if %2 {
      %cst_46 = arith.constant 0.000000e+00 : f32
      %63 = vector.broadcast %cst_46 : f32 to vector<1x1x3x8x128xf32>
      %c0_47 = arith.constant 0 : index
      %c0_48 = arith.constant 0 : index
      %c0_49 = arith.constant 0 : index
      %c0_50 = arith.constant 0 : index
      %c0_51 = arith.constant 0 : index
      %64 = vector.load %arg5[%c0_47, %c0_48, %c0_49, %c0_50, %c0_51] : memref<1x1x3x8x128xf32, #tpu.memory_space<vmem>>, vector<1x1x3x8x128xf32>
      tpu.vector_store %arg5[%c0_47, %c0_48, %c0_49, %c0_50, %c0_51], %63 {strides = array<i32>} : memref<1x1x3x8x128xf32, #tpu.memory_space<vmem>>, vector<1x1x3x8x128xf32>,
    } else {
    }
    %c0 = arith.constant 0 : index
    %c0_1 = arith.constant 0 : index
    %c0_2 = arith.constant 0 : index
    %c0_3 = arith.constant 0 : index
    %3 = vector.load %arg3[%c0, %c0_1, %c0_2, %c0_3] : memref<1x1x4x128xf32, #tpu.memory_space<vmem>>, vector<1x1x4x128xf32>
    %4 = vector.shape_cast %3 : vector<1x1x4x128xf32> to vector<4x128xf32>
    %c0_4 = arith.constant 0 : index
    %c0_5 = arith.constant 0 : index
    %c0_6 = arith.constant 0 : index
    %c0_7 = arith.constant 0 : index
    %5 = vector.load %arg4[%c0_4, %c0_5, %c0_6, %c0_7] : memref<1x1x4x128xf32, #tpu.memory_space<vmem>>, vector<1x1x4x128xf32>
    %6 = vector.shape_cast %5 : vector<1x1x4x128xf32> to vector<4x128xf32>
    %7 = arith.mulf %4, %6 : vector<4x128xf32>
    %cst = arith.constant 0.000000e+00 : f32
    %8 = vector.broadcast %cst : f32 to vector<4x128xf32>
    %9 = arith.maximumf %4, %8 : vector<4x128xf32>
    %10 = arith.subf %9, %7 : vector<4x128xf32>
    %11 = math.absf %4 : vector<4x128xf32>
    %cst_8 = arith.constant 0.000000e+00 : f32
    %12 = vector.broadcast %cst_8 : f32 to vector<4x128xf32>
    %13 = arith.subf %12, %11 : vector<4x128xf32>
    %14 = math.exp %13 : vector<4x128xf32>
    %15 = math.log1p %14 : vector<4x128xf32>
    %16 = arith.addf %10, %15 : vector<4x128xf32>
    %c0_9 = arith.constant 0 : index
    %c0_10 = arith.constant 0 : index
    %c0_11 = arith.constant 0 : index
    %c0_12 = arith.constant 0 : index
    %c0_13 = arith.constant 0 : index
    %17 = vector.load %arg5[%c0_9, %c0_10, %c0_11, %c0_12, %c0_13] : memref<1x1x3x8x128xf32, #tpu.memory_space<vmem>>, vector<1x1x1x8x128xf32>
    %18 = vector.shape_cast %17 : vector<1x1x1x8x128xf32> to vector<8x128xf32>
    %cst_14 = arith.constant dense<0.000000e+00> : vector<128xf32>
    %19 = vector.multi_reduction <add>, %7, %cst_14 [0] : vector<4x128xf32> to vector<128xf32>
    %20 = vector.shape_cast %19 : vector<128xf32> to vector<1x128xf32>
    %21 = tpu.iota {dimensions = array<i32: 0>} : vector<8x128xi32>
    %c0_i32_15 = arith.constant 0 : i32
    %22 = vector.broadcast %c0_i32_15 : i32 to vector<8x128xi32>
    %23 = arith.cmpi eq, %21, %22 : vector<8x128xi32>
    %24 = vector.shape_cast %20 : vector<1x128xf32> to vector<1x128xf32>
    %25 = vector.broadcast %24 : vector<1x128xf32> to vector<8x128xf32>
    %cst_16 = arith.constant 0.000000e+00 : f32
    %26 = vector.broadcast %cst_16 : f32 to vector<8x128xf32>
    %27 = arith.select %23, %25, %26 : vector<8x128xi1>, vector<8x128xf32>
    %28 = arith.addf %18, %27 : vector<8x128xf32>
    %c0_17 = arith.constant 0 : index
    %c0_18 = arith.constant 0 : index
    %c0_19 = arith.constant 0 : index
    %c0_20 = arith.constant 0 : index
    %c0_21 = arith.constant 0 : index
    %29 = vector.load %arg5[%c0_17, %c0_18, %c0_19, %c0_20, %c0_21] : memref<1x1x3x8x128xf32, #tpu.memory_space<vmem>>, vector<1x1x1x8x128xf32>
    %30 = vector.shape_cast %29 : vector<1x1x1x8x128xf32> to vector<8x128xf32>
    %31 = vector.shape_cast %28 : vector<8x128xf32> to vector<1x1x1x8x128xf32>
    tpu.vector_store %arg5[%c0_17, %c0_18, %c0_19, %c0_20, %c0_21], %31 {strides = array<i32>} : memref<1x1x3x8x128xf32, #tpu.memory_space<vmem>>, vector<1x1x1x8x128xf32>,
    %c0_22 = arith.constant 0 : index
    %c0_23 = arith.constant 0 : index
    %c1 = arith.constant 1 : index
    %c0_24 = arith.constant 0 : index
    %c0_25 = arith.constant 0 : index
    %32 = vector.load %arg5[%c0_22, %c0_23, %c1, %c0_24, %c0_25] : memref<1x1x3x8x128xf32, #tpu.memory_space<vmem>>, vector<1x1x1x8x128xf32>
    %33 = vector.shape_cast %32 : vector<1x1x1x8x128xf32> to vector<8x128xf32>
    %34 = arith.addf %4, %6 : vector<4x128xf32>
    %cst_26 = arith.constant dense<0.000000e+00> : vector<128xf32>
    %35 = vector.multi_reduction <add>, %34, %cst_26 [0] : vector<4x128xf32> to vector<128xf32>
    %36 = vector.shape_cast %35 : vector<128xf32> to vector<1x128xf32>
    %37 = tpu.iota {dimensions = array<i32: 0>} : vector<8x128xi32>
    %c0_i32_27 = arith.constant 0 : i32
    %38 = vector.broadcast %c0_i32_27 : i32 to vector<8x128xi32>
    %39 = arith.cmpi eq, %37, %38 : vector<8x128xi32>
    %40 = vector.shape_cast %36 : vector<1x128xf32> to vector<1x128xf32>
    %41 = vector.broadcast %40 : vector<1x128xf32> to vector<8x128xf32>
    %cst_28 = arith.constant 0.000000e+00 : f32
    %42 = vector.broadcast %cst_28 : f32 to vector<8x128xf32>
    %43 = arith.select %39, %41, %42 : vector<8x128xi1>, vector<8x128xf32>
    %44 = arith.addf %33, %43 : vector<8x128xf32>
    %c0_29 = arith.constant 0 : index
    %c0_30 = arith.constant 0 : index
    %c1_31 = arith.constant 1 : index
    %c0_32 = arith.constant 0 : index
    %c0_33 = arith.constant 0 : index
    %45 = vector.load %arg5[%c0_29, %c0_30, %c1_31, %c0_32, %c0_33] : memref<1x1x3x8x128xf32, #tpu.memory_space<vmem>>, vector<1x1x1x8x128xf32>
    %46 = vector.shape_cast %45 : vector<1x1x1x8x128xf32> to vector<8x128xf32>
    %47 = vector.shape_cast %44 : vector<8x128xf32> to vector<1x1x1x8x128xf32>
    tpu.vector_store %arg5[%c0_29, %c0_30, %c1_31, %c0_32, %c0_33], %47 {strides = array<i32>} : memref<1x1x3x8x128xf32, #tpu.memory_space<vmem>>, vector<1x1x1x8x128xf32>,
    %c0_34 = arith.constant 0 : index
    %c0_35 = arith.constant 0 : index
    %c2 = arith.constant 2 : index
    %c0_36 = arith.constant 0 : index
    %c0_37 = arith.constant 0 : index
    %48 = vector.load %arg5[%c0_34, %c0_35, %c2, %c0_36, %c0_37] : memref<1x1x3x8x128xf32, #tpu.memory_space<vmem>>, vector<1x1x1x8x128xf32>
    %49 = vector.shape_cast %48 : vector<1x1x1x8x128xf32> to vector<8x128xf32>
    %cst_38 = arith.constant dense<0.000000e+00> : vector<128xf32>
    %50 = vector.multi_reduction <add>, %16, %cst_38 [0] : vector<4x128xf32> to vector<128xf32>
    %51 = vector.shape_cast %50 : vector<128xf32> to vector<1x128xf32>
    %52 = tpu.iota {dimensions = array<i32: 0>} : vector<8x128xi32>
    %c0_i32_39 = arith.constant 0 : i32
    %53 = vector.broadcast %c0_i32_39 : i32 to vector<8x128xi32>
    %54 = arith.cmpi eq, %52, %53 : vector<8x128xi32>
    %55 = vector.shape_cast %51 : vector<1x128xf32> to vector<1x128xf32>
    %56 = vector.broadcast %55 : vector<1x128xf32> to vector<8x128xf32>
    %cst_40 = arith.constant 0.000000e+00 : f32
    %57 = vector.broadcast %cst_40 : f32 to vector<8x128xf32>
    %58 = arith.select %54, %56, %57 : vector<8x128xi1>, vector<8x128xf32>
    %59 = arith.addf %49, %58 : vector<8x128xf32>
    %c0_41 = arith.constant 0 : index
    %c0_42 = arith.constant 0 : index
    %c2_43 = arith.constant 2 : index
    %c0_44 = arith.constant 0 : index
    %c0_45 = arith.constant 0 : index
    %60 = vector.load %arg5[%c0_41, %c0_42, %c2_43, %c0_44, %c0_45] : memref<1x1x3x8x128xf32, #tpu.memory_space<vmem>>, vector<1x1x1x8x128xf32>
    %61 = vector.shape_cast %60 : vector<1x1x1x8x128xf32> to vector<8x128xf32>
    %62 = vector.shape_cast %59 : vector<8x128xf32> to vector<1x1x1x8x128xf32>
    tpu.vector_store %arg5[%c0_41, %c0_42, %c2_43, %c0_44, %c0_45], %62 {strides = array<i32>} : memref<1x1x3x8x128xf32, #tpu.memory_space<vmem>>, vector<1x1x1x8x128xf32>,
    return
  }
  func.func @transform_0(%arg0: i32, %arg1: i32, %arg2: i32) -> (i32, i32, i32, i32) {
    %c0_i32 = arith.constant 0 : i32
    %c0_i32_0 = arith.constant 0 : i32
    return %arg1, %arg0, %arg2, %c0_i32 : i32, i32, i32, i32
  }
  func.func @transform_1(%arg0: i32, %arg1: i32, %arg2: i32) -> (i32, i32, i32, i32) {
    %c0_i32 = arith.constant 0 : i32
    %c0_i32_0 = arith.constant 0 : i32
    return %arg1, %arg0, %arg2, %c0_i32 : i32, i32, i32, i32
  }
  func.func @transform_2(%arg0: i32, %arg1: i32, %arg2: i32) -> (i32, i32, i32, i32, i32) {
    %c0_i32 = arith.constant 0 : i32
    %c0_i32_0 = arith.constant 0 : i32
    %c0_i32_1 = arith.constant 0 : i32
    %c0_i32_2 = arith.constant 0 : i32
    return %arg0, %arg1, %c0_i32, %c0_i32_0, %c0_i32_1 : i32, i32, i32, i32, i32
  }
}

</mosaic_0001>

<bundles_post_ra>
// kernel: bce_dice_loss.1
= control target key start
LH: loop header
LB: loop body
LE: loop exit
PB: predicated region body
PF: predicated region fallthrough
CT: control target
= control target key end

     0   :  { %s538_s9 = smov 0   ;;  %s540_s10 = smov 0   ;;  %s598_s0 = inlined_call_operand.vmem [shape: f32[2,3,4,128], index: 0, kind: input, shape index: {}]   ;;  %s599_s1 = inlined_call_operand.vmem [shape: f32[2,3,4,128], index: 1, kind: input, shape index: {}]   ;;  %s600_s2 = inlined_call_operand.vmem [shape: f32[3,2,3,8,128], index: 2, kind: output, shape index: {}]  }
   0x1   :  { %s542_s11 = smov 0   ;;  %s544_s12 = smov 0  }
   0x2   :  { %s546_s13 = smov 0  }
   0x3 LB: > { %s27_s14 = sadd.s32 1, %s513_s11  ;;  %s31_s15 = sadd.s32 1, %s517_s12  ;;  %s521_s13 = sphi %s546_s13, %s12_s13   ;;  %s517_s12 = sphi %s544_s12, %s604_s12   ;;  %s513_s11 = sphi %s542_s11, %s603_s11   ;;  %s509_s10 = sphi %s540_s10, %s602_s10   ;;  %s505_s9 = sphi %s538_s9, %s601_s9  }
   0x4   : > { %p29_p0 = scmp.ge.s32.totalorder %s27_s14, 2  ;;  %p426_p1 = scmp.ge.s32.totalorder %s521_s13, 1 }
   0x5   : > { %p163_p2 = scmp.lt.s32.totalorder %s521_s13, 7 }
   0x6   : > { %s606_s14 = smov (%p29_p0, %s27_s14), 0  ;;  %s608_s15 = smov (!%p29_p0, %s31_s15), %s517_s12 }
   0x7   : > { %p164_p3 = pnand %p426_p1, %p163_p2  ;;  %p33_p4 = scmp.ge.s32.totalorder %s608_s15, 3 }
   0x8   : > { %p206_p5 = scmp.lt.s32.totalorder (!%p164_p3), %s505_s9, 1  ;;  %p208_p6 = scmp.lt.s32.totalorder (!%p164_p3), %s509_s10, 2 }
   0x9   : > { %s610_s15 = smov (%p33_p4, %s608_s15), 0  ;;  %167 = sbr.rel (%p164_p3) target bundleno = 63 (0x3f), region = 28 }
   0xe   : > { %s612_s9 = smov (!%p206_p5, %s505_s9), 1  ;;  %s614_s10 = smov (!%p208_p6, %s509_s10), 2  ;;  %vm264_vm0 = vcmask 1043456   ;;  %v272_v11 = vlaneseq }
   0xf   : > { %s436_s16 = smul.u32 3, %s612_s9 }
  0x10   : > { %s437_s25 = smul.u32 6, %s614_s10  ;;  %v273_v16 = vshrl.u32 %v272_v11, 7 }
  0x11   : > { %s214_s17 = sadd.s32 %s436_s16, %s614_s10 }
  0x12   : > { %s427_s18 = sshll.u32 %s214_s17, 2  ;;  %s234_s26 = sadd.s32 %s437_s25, %s436_s16  ;;  %vm274_vm1 = vcmp.eq.s32.totalorder %v273_v16, 0 }
  0x13   : > { %s216_s21 = scalar_lea.vmem %s598_s0, %s427_s18  ;;  %s227_s24 = scalar_lea.vmem %s599_s1, %s427_s18 }
  0x14   : > { %v244_v0 = vld [vmem:[%s216_s21] sm:$0xf]  ;;  %s429_s27 = sshll.u32 %s234_s26, 3 }
  0x15   : > { %v245_v1 = vld [vmem:[%s227_s24] sm:$0xf]  ;;  %v249_v2 = vand.u32 2147483647, %v244_v0  ;;  %s236_s30 = scalar_lea.vmem %s600_s2, %s429_s27  ;;  %v247_v29 = vmax.f32 %v244_v0, 0.0 }
  0x16   : > { %v246_v3 = vmul.f32 %v245_v1, %v244_v0  ;;  %v280_v4 = vadd.f32 %v245_v1, %v244_v0 }
  0x17   : > { %v250_v5 = vsub.f32 0.0, %v249_v2 }
  0x18   : > { %v265_v6 = vsel %vm264_vm0, %v246_v3, 0.0  ;;  %v281_v7 = vsel %vm264_vm0, %v280_v4, 0.0  ;;  %v248_v33 = vsub.f32 %v247_v29, %v246_v3 }
  0x19   : > { %v251_v8 = vmul.f32 1.442695, %v250_v5  ;;  %v266_v9 = vrot.slane %v265_v6, 4  ;;  %v282_v10 = vrot.slane %v281_v7, 4 }
  0x1b   : > { %479 = vpow2.f32 %v251_v8  ;;  %v267_v12 = vadd.f32 %v266_v9, %v265_v6  ;;  %v283_v13 = vadd.f32 %v282_v10, %v281_v7 }
  0x1d   : > { %v268_v14 = vrot.slane %v267_v12, 2  ;;  %v284_v15 = vrot.slane %v283_v13, 2 }
  0x1f   : > { %v269_v17 = vadd.f32 %v268_v14, %v267_v12  ;;  %v285_v18 = vadd.f32 %v284_v15, %v283_v13 }
  0x21   : > { %v480_v19 = vpop.eup %479  ;;  %v270_v20 = vrot.slane %v269_v17, 1  ;;  %v286_v21 = vrot.slane %v285_v18, 1 }
  0x22   : > { %v253_v22 = vadd.f32 1.0, %v480_v19  ;;  %v256_v23 = vmul.f32 -0.5, %v480_v19  ;;  %v259_v30 = vand.u32 2147483647, %v480_v19 }
  0x23   : > { %v271_v24 = vadd.f32 %v270_v20, %v269_v17  ;;  %v287_v25 = vadd.f32 %v286_v21, %v285_v18 }
  0x24   : > { %481 = vlog2.f32 %v253_v22  ;;  %v257_v28 = vadd.f32 1.0, %v256_v23  ;;  %vm260_vm2 = vcmp.lt.f32.partialorder %v259_v30, 0.0004427343 }
  0x25   : > { %v275_v26 = vsel %vm274_vm1, %v271_v24, 0.0  ;;  %v288_v27 = vsel %vm274_vm1, %v287_v25, 0.0 }
  0x26   : > { %277 = vst [vmem:[%s236_s30] sm:$0xff] %v275_v26  ;;  %v258_v31 = vmul.f32 %v480_v19, %v257_v28 }
  0x27   : > { %431 = vst [vmem:[%s236_s30 + $0x8] sm:$0xff] %v288_v27 }
  0x2a   : > { %v482_v32 = vpop.eup %481 }
  0x2b   : > { %v255_v34 = vmul.f32 0.6931472, %v482_v32 }
  0x2d   : > { %v261_v35 = vsel %vm260_vm2, %v258_v31, %v255_v34 }
  0x2e   : > { %v262_v36 = vadd.f32 %v261_v35, %v248_v33 }
  0x30   : > { %v293_v37 = vsel %vm264_vm0, %v262_v36, 0.0 }
  0x31   : > { %v294_v38 = vrot.slane %v293_v37, 4 }
  0x33   : > { %v295_v39 = vadd.f32 %v294_v38, %v293_v37 }
  0x35   : > { %v296_v40 = vrot.slane %v295_v39, 2 }
  0x37   : > { %v297_v41 = vadd.f32 %v296_v40, %v295_v39 }
  0x39   : > { %v298_v42 = vrot.slane %v297_v41, 1 }
  0x3b   : > { %v299_v43 = vadd.f32 %v298_v42, %v297_v41 }
  0x3d   : > { %v300_v44 = vsel %vm274_vm1, %v299_v43, 0.0 }
  0x3e   : > { %433 = vst [vmem:[%s236_s30 + $0x10] sm:$0xff] %v300_v44 }
  0x3f PF: > { %s12_s13 = sadd.s32 1, %s521_s13   ;;  %s601_s9 = smov %s513_s11 }
  0x40   : > { %p9_p7 = scmp.ge.s32.totalorder %s12_s13, 8   ;;  %s602_s10 = smov %s517_s12 }
  0x41   : > { %s603_s11 = smov %s606_s14  ;;  %s604_s12 = smov %s610_s15 }
  0x42   :  { %11 = sbr.rel (!%p9_p7) target bundleno = 3 (0x3), region = 67 }

</bundles_post_ra>
